<compile_context>
chip_gen: v5e
topology: v5e:2x2
jax: 0.10.0
libtpu: 0.0.40
codegen_flags: <defaults>
</compile_context>

<pallas_src>
import jax
import jax.numpy as jnp
from jax.experimental import pallas as pl
from jax.experimental.pallas import tpu as pltpu


def _round_up(x, m):
    return ((x + m - 1) // m) * m


# ---------------------------------------------------------------------------
# Kernels
# ---------------------------------------------------------------------------
def ffn_kernel_out_acc(x_ref, w1_ref, b1_ref, w2_ref, b2_ref, o_ref):
    """FFN step for f32 outputs: accumulate directly into the resident o_ref
    (output block index is constant across the hidden axis), saving the
    tm*Cp*4-byte scratch accumulator."""
    h_idx = pl.program_id(1)

    @pl.when(h_idx == 0)
    def _init():
        o_ref[...] = jnp.zeros_like(o_ref)

    # First linear for this hidden tile: bf16 MXU matmul, f32 accumulation.
    h = jnp.dot(x_ref[...], w1_ref[...], preferred_element_type=jnp.float32)
    # Bias + ReLU in f32 on the VPU (v5e-safe, no bf16 VALU needed).
    h = jnp.maximum(h + b1_ref[...], 0.0)
    # Second linear: partial contraction over this hidden tile, accumulated
    # into the resident f32 output block.
    o_ref[...] += jnp.dot(h.astype(w2_ref.dtype), w2_ref[...],
                          preferred_element_type=jnp.float32)

    @pl.when(h_idx == pl.num_programs(1) - 1)
    def _finalize():
        o_ref[...] = o_ref[...] + b2_ref[...]


def ffn_kernel_scratch_acc(x_ref, w1_ref, b1_ref, w2_ref, b2_ref, o_ref, acc_ref):
    """FFN step for non-f32 outputs: accumulate in an f32 VMEM scratch, cast
    to the output dtype only on the last hidden step."""
    h_idx = pl.program_id(1)

    @pl.when(h_idx == 0)
    def _init():
        acc_ref[...] = jnp.zeros_like(acc_ref)

    h = jnp.dot(x_ref[...], w1_ref[...], preferred_element_type=jnp.float32)
    h = jnp.maximum(h + b1_ref[...], 0.0)
    acc_ref[...] += jnp.dot(h.astype(w2_ref.dtype), w2_ref[...],
                            preferred_element_type=jnp.float32)

    @pl.when(h_idx == pl.num_programs(1) - 1)
    def _finalize():
        o_ref[...] = (acc_ref[...] + b2_ref[...]).astype(o_ref.dtype)


# ---------------------------------------------------------------------------
# Tile sizing
# ---------------------------------------------------------------------------
def _vmem_budget_bytes():
    """(budget, capacity) in bytes. Budget = per-core VMEM minus ~16 MiB of
    headroom for compiler internal scratch, semaphores, DMA descriptors."""
    try:
        cap = int(pltpu.get_tpu_info().vmem_capacity_bytes)
    except Exception:
        cap = 64 * 1024 * 1024  # conservative (v7x-sized) fallback
    budget = max(cap - 16 * 1024 * 1024, 16 * 1024 * 1024)
    return budget, cap


def _choose_th(H, th_max):
    """128-aligned hidden tile minimizing padding of round_up(H, 128); ties
    broken toward the largest tile (fewest ~0.35us grid steps)."""
    h128 = _round_up(H, 128)
    cand = max(128, (min(th_max, h128) // 128) * 128)
    best_th, best_pad = 128, None
    for th in range(cand, 127, -128):
        pad = _round_up(h128, th) - h128
        if best_pad is None or pad < best_pad:
            best_pad, best_th = pad, th
        if pad == 0:
            break  # descending -> first exact divisor is the largest
    return best_th


def _select_th(Cp, H, th_max, budget):
    th = _choose_th(H, th_max)
    # Keep the double-buffered W1+W2 tiles (8 * Cp * th bytes) under ~half the
    # budget so the row tiles get the remainder.
    while th > 128 and 8 * Cp * th > budget // 2:
        th = max(128, ((th // 2) // 128) * 128)
    Hp = _round_up(_round_up(H, 128), th)
    return th, Hp


def _select_tm(M, Cp, th, out_bytes, use_scratch_acc, tm_max, budget, cap):
    # Per-tile VMEM working set:
    #   x:   2 * tm*Cp*2   (bf16, double-buffered)
    #   o:   2 * tm*Cp*out_bytes
    #   acc:     tm*Cp*4   (only when output dtype != f32)
    #   W1:  2 * Cp*th*2,  W2: 2 * th*Cp*2,  biases: tiny
    #   h:  ~tm*th*6       (f32 hidden tile + bf16 copy)
    acc_bytes = 4 if use_scratch_acc else 0
    fixed = 8 * Cp * th + 8 * (th + Cp)
    per_row = Cp * (4 + 2 * out_bytes + acc_bytes) + 6 * th
    tm_budget = max(128, (budget - fixed) // per_row)

    m128 = _round_up(M, 128)
    tm = min(tm_max, int(tm_budget), m128)
    tm = max(128, (tm // 128) * 128)
    if tm >= 256:
        tm = (tm // 256) * 256  # full 256-wide MXU tiles on v6e/v7x

    # Dual-TensorCore parts (v7x, 64 MiB/TC): make sure the 'parallel' row
    # axis has >= 2 blocks so the second core isn't idle.
    two_cores = cap <= 64 * 1024 * 1024
    if two_cores and m128 >= 256:
        tm = min(tm, _round_up(-(-m128 // 2), 128))

    Mp = _round_up(M, tm)
    return tm, Mp


# ---------------------------------------------------------------------------
# Public API
# ---------------------------------------------------------------------------
def make_feed_forward(w1, b1, w2, b2, *, tm_max=1024, th_max=1024):
    """Preprocess (pad + bf16-cast) the FFN weights ONCE and return a callable
    x -> FFN(x). Hoists weight preprocessing out of the per-call hot path."""
    C, H = w1.shape
    assert w2.shape == (H, C) and b1.shape == (H,) and b2.shape == (C,)

    budget, cap = _vmem_budget_bytes()
    Cp = _round_up(C, 128)
    th, Hp = _select_th(Cp, H, th_max, budget)

    # One-time weight padding / cast (skipped when already lane-aligned).
    # Zero padding is exact: padded hidden columns give relu(0 + 0) = 0 and
    # contribute nothing to the second matmul; padded output columns / rows
    # are sliced off after the kernel.
    if (Cp, Hp) == (C, H):
        w1p = w1.astype(jnp.bfloat16)
        w2p = w2.astype(jnp.bfloat16)
    else:
        w1p = jnp.zeros((Cp, Hp), jnp.bfloat16).at[:C, :H].set(w1.astype(jnp.bfloat16))
        w2p = jnp.zeros((Hp, Cp), jnp.bfloat16).at[:H, :C].set(w2.astype(jnp.bfloat16))
    b1p = jnp.zeros((1, Hp), jnp.float32).at[0, :H].set(b1.astype(jnp.float32))
    b2p = jnp.zeros((1, Cp), jnp.float32).at[0, :C].set(b2.astype(jnp.float32))

    def apply(x):
        B, T, Cx = x.shape
        assert Cx == C
        M = B * T
        out_dtype = x.dtype
        out_bytes = jnp.dtype(out_dtype).itemsize
        use_scratch = jnp.dtype(out_dtype) != jnp.dtype(jnp.float32)

        tm, Mp = _select_tm(M, Cp, th, out_bytes, use_scratch, tm_max, budget, cap)

        # Pad / cast activations (skip when already aligned).
        xf = x.reshape(M, C)
        if (Mp, Cp) == (M, C):
            x2 = xf.astype(jnp.bfloat16)
        else:
            x2 = jnp.zeros((Mp, Cp), jnp.bfloat16).at[:M, :C].set(
                xf.astype(jnp.bfloat16))

        n_m = Mp // tm
        n_h = Hp // th

        flops = 4 * Mp * Cp * Hp  # two matmuls, 2 flops/MAC
        bytes_accessed = (x2.size * 2
                          + (w1p.size + w2p.size) * 2 * n_m  # weights re-streamed per row tile
                          + b1p.size * 4 + b2p.size * 4
                          + Mp * Cp * out_bytes)

        in_specs = [
            pl.BlockSpec((tm, Cp), lambda i, h: (i, 0)),   # x row tile
            pl.BlockSpec((Cp, th), lambda i, h: (0, h)),   # W1 hidden tile
            pl.BlockSpec((1, th),  lambda i, h: (0, h)),   # b1 hidden tile
            pl.BlockSpec((th, Cp), lambda i, h: (h, 0)),   # W2 hidden tile
            pl.BlockSpec((1, Cp),  lambda i, h: (0, 0)),   # b2 (constant block)
        ]
        out_spec = pl.BlockSpec((tm, Cp), lambda i, h: (i, 0))

        if use_scratch:
            kernel = ffn_kernel_scratch_acc
            scratch_shapes = [pltpu.VMEM((tm, Cp), jnp.float32)]
        else:
            kernel = ffn_kernel_out_acc
            scratch_shapes = []

        out = pl.pallas_call(
            kernel,
            out_shape=jax.ShapeDtypeStruct((Mp, Cp), out_dtype),
            grid_spec=pltpu.PrefetchScalarGridSpec(
                num_scalar_prefetch=0,
                grid=(n_m, n_h),                      # reduction (hidden) axis last
                in_specs=in_specs,
                out_specs=out_spec,
                scratch_shapes=scratch_shapes),
            compiler_params=pltpu.CompilerParams(
                dimension_semantics=("parallel", "arbitrary"),
                vmem_limit_bytes=int(budget)),
            cost_estimate=pl.CostEstimate(
                flops=int(flops), transcendentals=0,
                bytes_accessed=int(bytes_accessed)),
        )(x2, w1p, b1p, w2p, b2p)

        if (Mp, Cp) == (M, C):
            return out.reshape(B, T, C)
        return out[:M, :C].reshape(B, T, C)

    return apply


def feed_forward(x, w1, b1, w2, b2, **kwargs):
    """Convenience one-shot wrapper (prefer make_feed_forward for repeated calls
    so weight preprocessing is done once)."""
    return make_feed_forward(w1, b1, w2, b2, **kwargs)(x)


def feed_forward_ref(x, w1, b1, w2, b2):
    """Pure-JAX reference mirroring the kernel's bf16-operand / f32-accumulate path."""
    h = jnp.dot(x.astype(jnp.bfloat16), w1.astype(jnp.bfloat16),
                preferred_element_type=jnp.float32) + b1
    h = jnp.maximum(h, 0.0)
    y = jnp.dot(h.astype(jnp.bfloat16), w2.astype(jnp.bfloat16),
                preferred_element_type=jnp.float32) + b2
    return y.astype(x.dtype)


if __name__ == "__main__":
    # Small shapes consistent with the module: batch=2, seq=8, n_embed=32.
    B, T, C = 2, 8, 32
    H = 4 * C

    key = jax.random.PRNGKey(0)
    kx, kw1, kb1, kw2, kb2 = jax.random.split(key, 5)

    x = jax.random.normal(kx, (B, T, C), dtype=jnp.float32)

    # Deterministic nn.Linear-style init: U(-1/sqrt(in), 1/sqrt(in)).
    lim1 = 1.0 / (C ** 0.5)
    lim2 = 1.0 / (H ** 0.5)
    w1 = jax.random.uniform(kw1, (C, H), minval=-lim1, maxval=lim1, dtype=jnp.float32)
    b1 = jax.random.uniform(kb1, (H,),   minval=-lim1, maxval=lim1, dtype=jnp.float32)
    w2 = jax.random.uniform(kw2, (H, C), minval=-lim2, maxval=lim2, dtype=jnp.float32)
    b2 = jax.random.uniform(kb2, (C,),   minval=-lim2, maxval=lim2, dtype=jnp.float32)

    ffn = make_feed_forward(w1, b1, w2, b2)

    # f32 path (output-resident accumulator kernel).
    y = jax.block_until_ready(ffn(x))
    y_ref = feed_forward_ref(x, w1, b1, w2, b2)
    assert y.shape == (B, T, C)
    assert jnp.allclose(y, y_ref, atol=1e-2, rtol=1e-2), float(jnp.max(jnp.abs(y - y_ref)))

    # bf16 path (scratch-accumulator kernel).
    xb = x.astype(jnp.bfloat16)
    yb = jax.block_until_ready(ffn(xb))
    yb_ref = feed_forward_ref(xb, w1, b1, w2, b2)
    assert yb.shape == (B, T, C)
    assert jnp.allclose(yb.astype(jnp.float32), yb_ref.astype(jnp.float32),
                        atol=5e-2, rtol=5e-2)

    print("KERNEL_OK")
</pallas_src>

<mosaic_0001>
module attributes {stable_mosaic.version = 11 : i64} {
  func.func @ffn_kernel_out_acc(%arg0: i32, %arg1: i32, %arg2: memref<128x128xbf16, #tpu.memory_space<vmem>>, %arg3: memref<128x128xbf16, #tpu.memory_space<vmem>>, %arg4: memref<1x128xf32, #tpu.memory_space<vmem>>, %arg5: memref<128x128xbf16, #tpu.memory_space<vmem>>, %arg6: memref<1x128xf32, #tpu.memory_space<vmem>>, %arg7: memref<128x128xf32, #tpu.memory_space<vmem>>) attributes {dimension_semantics = [#tpu.dimension_semantics<parallel>, #tpu.dimension_semantics<arbitrary>], iteration_bounds = array<i64: 1, 1>, scalar_prefetch = 0 : i64, scratch_operands = 0 : i64, tpu.core_type = #tpu.core_type<tc>, window_params = [{transform_indices = @transform_0, window_bounds = array<i64: 128, 128>}, {transform_indices = @transform_1, window_bounds = array<i64: 128, 128>}, {transform_indices = @transform_2, window_bounds = array<i64: 1, 128>}, {transform_indices = @transform_3, window_bounds = array<i64: 128, 128>}, {pipeline_mode = #tpu.pipeline_mode<synchronous>, transform_indices = @transform_4, window_bounds = array<i64: 1, 128>}, {transform_indices = @transform_5, window_bounds = array<i64: 128, 128>}]} {
    %c0_i32 = arith.constant 0 : i32
    %0 = arith.cmpi eq, %arg1, %c0_i32 : i32
    %1 = arith.extui %0 : i1 to i32
    %c0_i32_0 = arith.constant 0 : i32
    %2 = arith.cmpi ne, %1, %c0_i32_0 : i32
    scf.if %2 {
      %cst_16 = arith.constant 0.000000e+00 : f32
      %20 = vector.broadcast %cst_16 : f32 to vector<128x128xf32>
      %c0_17 = arith.constant 0 : index
      %c0_18 = arith.constant 0 : index
      %21 = vector.load %arg7[%c0_17, %c0_18] : memref<128x128xf32, #tpu.memory_space<vmem>>, vector<128x128xf32>
      tpu.vector_store %arg7[%c0_17, %c0_18], %20 {strides = array<i32>} : memref<128x128xf32, #tpu.memory_space<vmem>>, vector<128x128xf32>,
    } else {
    }
    %c0 = arith.constant 0 : index
    %c0_1 = arith.constant 0 : index
    %3 = vector.load %arg2[%c0, %c0_1] : memref<128x128xbf16, #tpu.memory_space<vmem>>, vector<128x128xbf16>
    %c0_2 = arith.constant 0 : index
    %c0_3 = arith.constant 0 : index
    %4 = vector.load %arg3[%c0_2, %c0_3] : memref<128x128xbf16, #tpu.memory_space<vmem>>, vector<128x128xbf16>
    %cst = arith.constant dense<0.000000e+00> : vector<128x128xf32>
    %5 = tpu.matmul %3, %4, %cst {dimension_numbers = #tpu.dot_dimension_numbers<[1], [0], [0], [1], [0, 0, 1, 1], [], []>} : vector<128x128xbf16>, vector<128x128xbf16>, vector<128x128xf32> -> vector<128x128xf32>
    %c0_4 = arith.constant 0 : index
    %c0_5 = arith.constant 0 : index
    %6 = vector.load %arg4[%c0_4, %c0_5] : memref<1x128xf32, #tpu.memory_space<vmem>>, vector<1x128xf32>
    %7 = vector.broadcast %6 : vector<1x128xf32> to vector<128x128xf32>
    %8 = arith.addf %5, %7 : vector<128x128xf32>
    %cst_6 = arith.constant 0.000000e+00 : f32
    %9 = vector.broadcast %cst_6 : f32 to vector<128x128xf32>
    %10 = arith.maximumf %8, %9 : vector<128x128xf32>
    %c0_7 = arith.constant 0 : index
    %c0_8 = arith.constant 0 : index
    %11 = vector.load %arg7[%c0_7, %c0_8] : memref<128x128xf32, #tpu.memory_space<vmem>>, vector<128x128xf32>
    %12 = arith.truncf %10 : vector<128x128xf32> to vector<128x128xbf16>
    %c0_9 = arith.constant 0 : index
    %c0_10 = arith.constant 0 : index
    %13 = vector.load %arg5[%c0_9, %c0_10] : memref<128x128xbf16, #tpu.memory_space<vmem>>, vector<128x128xbf16>
    %cst_11 = arith.constant dense<0.000000e+00> : vector<128x128xf32>
    %14 = tpu.matmul %12, %13, %cst_11 {dimension_numbers = #tpu.dot_dimension_numbers<[1], [0], [0], [1], [0, 0, 1, 1], [], []>} : vector<128x128xbf16>, vector<128x128xbf16>, vector<128x128xf32> -> vector<128x128xf32>
    %15 = arith.addf %11, %14 : vector<128x128xf32>
    %c0_12 = arith.constant 0 : index
    %c0_13 = arith.constant 0 : index
    %16 = vector.load %arg7[%c0_12, %c0_13] : memref<128x128xf32, #tpu.memory_space<vmem>>, vector<128x128xf32>
    tpu.vector_store %arg7[%c0_12, %c0_13], %15 {strides = array<i32>} : memref<128x128xf32, #tpu.memory_space<vmem>>, vector<128x128xf32>,
    %c0_i32_14 = arith.constant 0 : i32
    %17 = arith.cmpi eq, %arg1, %c0_i32_14 : i32
    %18 = arith.extui %17 : i1 to i32
    %c0_i32_15 = arith.constant 0 : i32
    %19 = arith.cmpi ne, %18, %c0_i32_15 : i32
    scf.if %19 {
      %c0_16 = arith.constant 0 : index
      %c0_17 = arith.constant 0 : index
      %20 = vector.load %arg7[%c0_16, %c0_17] : memref<128x128xf32, #tpu.memory_space<vmem>>, vector<128x128xf32>
      %c0_18 = arith.constant 0 : index
      %c0_19 = arith.constant 0 : index
      %21 = vector.load %arg6[%c0_18, %c0_19] : memref<1x128xf32, #tpu.memory_space<vmem>>, vector<1x128xf32>
      %22 = vector.broadcast %21 : vector<1x128xf32> to vector<128x128xf32>
      %23 = arith.addf %20, %22 : vector<128x128xf32>
      %c0_20 = arith.constant 0 : index
      %c0_21 = arith.constant 0 : index
      %24 = vector.load %arg7[%c0_20, %c0_21] : memref<128x128xf32, #tpu.memory_space<vmem>>, vector<128x128xf32>
      tpu.vector_store %arg7[%c0_20, %c0_21], %23 {strides = array<i32>} : memref<128x128xf32, #tpu.memory_space<vmem>>, vector<128x128xf32>,
    } else {
    }
    return
  }
  func.func @transform_0(%arg0: i32, %arg1: i32) -> (i32, i32) {
    %c0_i32 = arith.constant 0 : i32
    %c0_i32_0 = arith.constant 0 : i32
    return %arg0, %c0_i32 : i32, i32
  }
  func.func @transform_1(%arg0: i32, %arg1: i32) -> (i32, i32) {
    %c0_i32 = arith.constant 0 : i32
    %c0_i32_0 = arith.constant 0 : i32
    return %c0_i32, %arg1 : i32, i32
  }
  func.func @transform_2(%arg0: i32, %arg1: i32) -> (i32, i32) {
    %c0_i32 = arith.constant 0 : i32
    %c0_i32_0 = arith.constant 0 : i32
    return %c0_i32, %arg1 : i32, i32
  }
  func.func @transform_3(%arg0: i32, %arg1: i32) -> (i32, i32) {
    %c0_i32 = arith.constant 0 : i32
    %c0_i32_0 = arith.constant 0 : i32
    return %arg1, %c0_i32 : i32, i32
  }
  func.func @transform_4(%arg0: i32, %arg1: i32) -> (i32, i32) {
    %c0_i32 = arith.constant 0 : i32
    %c0_i32_0 = arith.constant 0 : i32
    %c0_i32_1 = arith.constant 0 : i32
    return %c0_i32, %c0_i32_0 : i32, i32
  }
  func.func @transform_5(%arg0: i32, %arg1: i32) -> (i32, i32) {
    %c0_i32 = arith.constant 0 : i32
    %c0_i32_0 = arith.constant 0 : i32
    return %arg0, %c0_i32 : i32, i32
  }
}

</mosaic_0001>

<bundles_post_ra>
// kernel: tpu_custom_call.1
= control target key start
LH: loop header
LB: loop body
LE: loop exit
PB: predicated region body
PF: predicated region fallthrough
CT: control target
= control target key end

     0   :  { %10 = vsyncpa [#allocation3], 0  ;;  %s834_s0 = inlined_call_operand.hbm [shape: bf16[128,128], index: 0, kind: input, shape index: {}]   ;;  %s835_s1 = inlined_call_operand.hbm [shape: bf16[128,128], index: 1, kind: input, shape index: {}]   ;;  %s836_s2 = inlined_call_operand.vmem [shape: f32[1,128], index: 2, kind: input, shape index: {}]   ;;  %s837_s3 = inlined_call_operand.hbm [shape: bf16[128,128], index: 3, kind: input, shape index: {}]   ;;  %s838_s4 = inlined_call_operand.vmem [shape: f32[1,128], index: 4, kind: input, shape index: {}]   ;;  %s839_s5 = inlined_call_operand.hbm [shape: f32[128,128], index: 5, kind: output, shape index: {}]  }
   0x1   :  { %11 = vsyncpa [#allocation6], 0 }
   0x2   :  { %12 = vsyncpa [#allocation4], 0  ;;  %s30_s20 = sshll.u32 %s835_s1, 4  ;;  %s778_s21 = smov [#allocation5]   ;;  %s31_s20 = int_to_ptr.hbm [resolvable:$true] %s30_s20 }
   0x3   :  { %s32_s22 = sshll.u32 %s778_s21, 4  ;;  %s17_s25 = sshll.u32 %s834_s0, 4  ;;  %s33_s22 = int_to_ptr.vmem [resolvable:$true] %s32_s22  ;;  %s18_s25 = int_to_ptr.hbm [resolvable:$true] %s17_s25 }
   0x4   :  { %s779_s26 = smov 64   ;;  %s780_s27 = smov 4  }
   0x5   :  { %38 = dma.hbm_to_vmem [thread:$0]  %s31_s20, 1024, %s33_s22, [#allocation6], %s779_s26, %s779_s26, %s780_s27  }
   0x6   :  { %s781_s28 = smov [#allocation2]   ;;  %s45_s7 = sshll.u32 %s837_s3, 4  ;;  %s46_s7 = int_to_ptr.hbm [resolvable:$true] %s45_s7 }
   0x7   :  { %s19_s29 = sshll.u32 %s781_s28, 4  ;;  %s782_s1 = smov [#allocation7]   ;;  %s20_s29 = int_to_ptr.vmem [resolvable:$true] %s19_s29 }
   0x8   :  { %25 = dma.hbm_to_vmem [thread:$0]  %s18_s25, 1024, %s20_s29, [#allocation3], %s779_s26, %s779_s26, %s780_s27  }
   0x9   :  { %s47_s8 = sshll.u32 %s782_s1, 4  ;;  %s48_s8 = int_to_ptr.vmem [resolvable:$true] %s47_s8 }
   0xa   :  { %53 = dma.hbm_to_vmem [thread:$0]  %s46_s7, 1024, %s48_s8, [#allocation6], %s779_s26, %s779_s26, %s780_s27  }
   0xb   :  { %772 = dma.done.wait [#allocation3], 1024  }
   0xc   :  { %773 = vsyncadd [#allocation3], 4294966272 }
   0xd   :  { %774 = dma.done.wait [#allocation6], 2048  }
   0xe   :  { %775 = vsyncadd [#allocation6], 4294965248  ;;  %v640_v0 = vld [vmem:[#allocation5 + $0x38] sm:$0xff]  ;;  %v639_v1 = vld [vmem:[#allocation5 + $0x30] sm:$0xff]  ;;  %s515_s13 = sshll.u32 %s839_s5, 4  ;;  %s784_s14 = smov 128   ;;  %s516_s13 = int_to_ptr.hbm [resolvable:$true] %s515_s13 }
   0xf   :  { %220 = vmatpush.bf16.msra.mxu0 %v640_v0  ;;  %649 = vmatpush.bf16.msra.mxu2 %v640_v0  ;;  %v638_v2 = vld [vmem:[#allocation5 + $0x28] sm:$0xff]  ;;  %v637_v3 = vld [vmem:[#allocation5 + $0x20] sm:$0xff]  ;;  %v636_v4 = vld [vmem:[#allocation5 + $0x18] sm:$0xff]  ;;  %s785_s15 = smov 8  }
  0x10   :  { %v635_v5 = vld [vmem:[#allocation5 + $0x10] sm:$0xff]  ;;  %v634_v6 = vld [vmem:[#allocation5 + $0x8] sm:$0xff]  ;;  %v633_v7 = vld [vmem:[#allocation5] sm:$0xff] }
  0x11   :  { %v625_v8 = vld [vmem:[#allocation2] sm:$0xff]  ;;  %v626_v10 = vld [vmem:[#allocation2 + $0x8] sm:$0xff]  ;;  %v648_v12 = vld [vmem:[#allocation7 + $0x38] sm:$0xff] }
  0x12   :  { %v629_v9 = vld [vmem:[#allocation2 + $0x20] sm:$0xff]  ;;  %v630_v11 = vld [vmem:[#allocation2 + $0x28] sm:$0xff]  ;;  %373 = vmatpush.bf16.msra.mxu1 %v648_v12  ;;  %v647_v13 = vld [vmem:[#allocation7 + $0x30] sm:$0xff]  ;;  %657 = vmatpush.bf16.msra.mxu3 %v648_v12 }
  0x13   :  { %221 = vmatpush.bf16.msra.mxu0 %v639_v1  ;;  %650 = vmatpush.bf16.msra.mxu2 %v639_v1  ;;  %v646_v14 = vld [vmem:[#allocation7 + $0x28] sm:$0xff]  ;;  %v645_v15 = vld [vmem:[#allocation7 + $0x20] sm:$0xff]  ;;  %v627_v16 = vld [vmem:[#allocation2 + $0x10] sm:$0xff] }
  0x14   :  { %v631_v17 = vld [vmem:[#allocation2 + $0x30] sm:$0xff]  ;;  %v628_v18 = vld [vmem:[#allocation2 + $0x18] sm:$0xff]  ;;  %v642_v22 = vld [vmem:[#allocation7 + $0x8] sm:$0xff] }
  0x15   :  { %v632_v19 = vld [vmem:[#allocation2 + $0x38] sm:$0xff]  ;;  %v643_v21 = vld [vmem:[#allocation7 + $0x10] sm:$0xff]  ;;  %v641_v23 = vld [vmem:[#allocation7] sm:$0xff] }
  0x16   :  { %374 = vmatpush.bf16.msra.mxu1 %v647_v13  ;;  %658 = vmatpush.bf16.msra.mxu3 %v647_v13  ;;  %v644_v20 = vld [vmem:[#allocation7 + $0x18] sm:$0xff]  ;;  %v674_v25 = vld [vmem:[%s836_s2] ss:$0 sm:$0xff] }
  0x17   :  { %222 = vmatpush.bf16.msra.mxu0 %v638_v2  ;;  %651 = vmatpush.bf16.msra.mxu2 %v638_v2 }
  0x1a   :  { %375 = vmatpush.bf16.msra.mxu1 %v646_v14  ;;  %659 = vmatpush.bf16.msra.mxu3 %v646_v14 }
  0x1b   :  { %223 = vmatpush.bf16.msra.mxu0 %v637_v3  ;;  %652 = vmatpush.bf16.msra.mxu2 %v637_v3 }
  0x1e   :  { %376 = vmatpush.bf16.msra.mxu1 %v645_v15  ;;  %660 = vmatpush.bf16.msra.mxu3 %v645_v15 }
  0x1f   :  { %224 = vmatpush.bf16.msra.mxu0 %v636_v4  ;;  %653 = vmatpush.bf16.msra.mxu2 %v636_v4 }
  0x22   :  { %377 = vmatpush.bf16.msra.mxu1 %v644_v20  ;;  %661 = vmatpush.bf16.msra.mxu3 %v644_v20 }
  0x23   :  { %225 = vmatpush.bf16.msra.mxu0 %v635_v5  ;;  %654 = vmatpush.bf16.msra.mxu2 %v635_v5 }
  0x26   :  { %378 = vmatpush.bf16.msra.mxu1 %v643_v21  ;;  %662 = vmatpush.bf16.msra.mxu3 %v643_v21 }
  0x27   :  { %226 = vmatpush.bf16.msra.mxu0 %v634_v6  ;;  %655 = vmatpush.bf16.msra.mxu2 %v634_v6 }
  0x2a   :  { %379 = vmatpush.bf16.msra.mxu1 %v642_v22  ;;  %663 = vmatpush.bf16.msra.mxu3 %v642_v22 }
  0x2b   :  { %227 = vmatpush.bf16.msra.mxu0 %v633_v7  ;;  %656 = vmatpush.bf16.msra.mxu2 %v633_v7 }
  0x2e   :  { %228 = vmatmul.bf16.vlgmr.msra.gmra.mxu0 %v625_v8  ;;  %248 = vmatmul.bf16.vlgmr.msra.gmra.mxu2 %v629_v9 }
  0x2f   :  { %380 = vmatpush.bf16.msra.mxu1 %v641_v23  ;;  %664 = vmatpush.bf16.msra.mxu3 %v641_v23 }
  0x3e   :  { %233 = vmatmul.bf16.gmra.mxu0 %v626_v10  ;;  %253 = vmatmul.bf16.gmra.mxu2 %v630_v11 }
  0x4e   :  { %238 = vmatmul.bf16.gmra.mxu0 %v627_v16  ;;  %258 = vmatmul.bf16.gmra.mxu2 %v631_v17  ;;  %v675_v17 = vld [vmem:[%s838_s4] ss:$0 sm:$0xff]  ;;  %s783_s4 = smov [#allocation8]  }
  0x4f   :  { %s513_s10 = sshll.u32 %s783_s4, 4  ;;  %s514_s10 = int_to_ptr.vmem [resolvable:$true] %s513_s10 }
  0x5e   :  { %243 = vmatmul.bf16.gmra.mxu0 %v628_v18  ;;  %263 = vmatmul.bf16.gmra.mxu2 %v632_v19 }
  0xab   :  { %v229_v24 = vpop.f32.mrf.mxu0 }
  0xac   :  { %v230_v26 = vadd.f32 %v674_v25, %v229_v24 }
  0xae   :  { %v269_v29 = vmax.f32 %v230_v26, 0.0 }
  0xb1   :  { %v249_v27 = vpop.f32.mrf.mxu2 }
  0xb2   :  { %v250_v32 = vadd.f32 %v674_v25, %v249_v27 }
  0xb3   :  { %v231_v28 = vpop.f32.mrf.mxu0 }
  0xb4   :  { %v232_v30 = vadd.f32 %v674_v25, %v231_v28  ;;  %v277_v37 = vmax.f32 %v250_v32, 0.0 }
  0xb6   :  { %v270_v31 = vmax.f32 %v232_v30, 0.0 }
  0xb8   :  { %v301_v33 = vpack.c.bf16 %v270_v31, %v269_v29 }
  0xb9   :  { %v251_v34 = vpop.f32.mrf.mxu2 }
  0xba   :  { %v252_v35 = vadd.f32 %v674_v25, %v251_v34  ;;  %381 = vmatmul.bf16.vlgmr.msra.gmra.mxu1 %v301_v33 }
  0xbb   :  { %v234_v36 = vpop.f32.mrf.mxu0 }
  0xbc   :  { %v278_v38 = vmax.f32 %v252_v35, 0.0  ;;  %v235_v40 = vadd.f32 %v674_v25, %v234_v36 }
  0xbe   :  { %v305_v39 = vpack.c.bf16 %v278_v38, %v277_v37  ;;  %v271_v43 = vmax.f32 %v235_v40, 0.0 }
  0xc0   :  { %401 = vmatmul.bf16.vlgmr.msra.gmra.mxu3 %v305_v39 }
  0xc1   :  { %v254_v41 = vpop.f32.mrf.mxu2 }
  0xc2   :  { %v255_v46 = vadd.f32 %v674_v25, %v254_v41 }
  0xc3   :  { %v236_v42 = vpop.f32.mrf.mxu0 }
  0xc4   :  { %v237_v44 = vadd.f32 %v674_v25, %v236_v42  ;;  %v279_v51 = vmax.f32 %v255_v46, 0.0 }
  0xc6   :  { %v272_v45 = vmax.f32 %v237_v44, 0.0 }
  0xc8   :  { %v302_v47 = vpack.c.bf16 %v272_v45, %v271_v43 }
  0xc9   :  { %v256_v48 = vpop.f32.mrf.mxu2 }
  0xca   :  { %v257_v49 = vadd.f32 %v674_v25, %v256_v48  ;;  %386 = vmatmul.bf16.gmra.mxu1 %v302_v47 }
  0xcb   :  { %v239_v50 = vpop.f32.mrf.mxu0 }
  0xcc   :  { %v280_v52 = vmax.f32 %v257_v49, 0.0  ;;  %v240_v54 = vadd.f32 %v674_v25, %v239_v50 }
  0xce   :  { %v306_v53 = vpack.c.bf16 %v280_v52, %v279_v51  ;;  %v273_v57 = vmax.f32 %v240_v54, 0.0 }
  0xd0   :  { %406 = vmatmul.bf16.gmra.mxu3 %v306_v53 }
  0xd1   :  { %v259_v55 = vpop.f32.mrf.mxu2 }
  0xd2   :  { %v260_v60 = vadd.f32 %v674_v25, %v259_v55 }
  0xd3   :  { %v241_v56 = vpop.f32.mrf.mxu0 }
  0xd4   :  { %v242_v58 = vadd.f32 %v674_v25, %v241_v56  ;;  %v281_v1 = vmax.f32 %v260_v60, 0.0 }
  0xd6   :  { %v274_v59 = vmax.f32 %v242_v58, 0.0 }
  0xd8   :  { %v303_v61 = vpack.c.bf16 %v274_v59, %v273_v57 }
  0xd9   :  { %v261_v62 = vpop.f32.mrf.mxu2 }
  0xda   :  { %v262_v63 = vadd.f32 %v674_v25, %v261_v62  ;;  %391 = vmatmul.bf16.gmra.mxu1 %v303_v61 }
  0xdb   :  { %v244_v0 = vpop.f32.mrf.mxu0 }
  0xdc   :  { %v282_v2 = vmax.f32 %v262_v63, 0.0  ;;  %v245_v4 = vadd.f32 %v674_v25, %v244_v0 }
  0xde   :  { %v307_v3 = vpack.c.bf16 %v282_v2, %v281_v1  ;;  %v275_v7 = vmax.f32 %v245_v4, 0.0 }
  0xe0   :  { %411 = vmatmul.bf16.gmra.mxu3 %v307_v3 }
  0xe1   :  { %v264_v5 = vpop.f32.mrf.mxu2 }
  0xe2   :  { %v265_v10 = vadd.f32 %v674_v25, %v264_v5 }
  0xe3   :  { %v246_v6 = vpop.f32.mrf.mxu0 }
  0xe4   :  { %v247_v8 = vadd.f32 %v674_v25, %v246_v6  ;;  %v283_v14 = vmax.f32 %v265_v10, 0.0 }
  0xe6   :  { %v276_v9 = vmax.f32 %v247_v8, 0.0 }
  0xe8   :  { %v304_v11 = vpack.c.bf16 %v276_v9, %v275_v7 }
  0xe9   :  { %v266_v12 = vpop.f32.mrf.mxu2 }
  0xea   :  { %v267_v13 = vadd.f32 %v674_v25, %v266_v12  ;;  %396 = vmatmul.bf16.gmra.mxu1 %v304_v11 }
  0xec   :  { %v284_v15 = vmax.f32 %v267_v13, 0.0 }
  0xee   :  { %v308_v16 = vpack.c.bf16 %v284_v15, %v283_v14 }
  0xf0   :  { %416 = vmatmul.bf16.gmra.mxu3 %v308_v16 }
 0x137   :  { %v382_v18 = vpop.f32.mrf.mxu1 }
 0x138   :  { %v477_v19 = vadd.f32 %v675_v17, %v382_v18 }
 0x13a   :  { %493 = vst [vmem:[#allocation8] sm:$0xff] %v477_v19 }
 0x13f   :  { %v384_v20 = vpop.f32.mrf.mxu1 }
 0x140   :  { %v478_v21 = vadd.f32 %v675_v17, %v384_v20 }
 0x142   :  { %494 = vst [vmem:[#allocation8 + $0x8] sm:$0xff] %v478_v21 }
 0x143   :  { %v402_v22 = vpop.f32.mrf.mxu3 }
 0x144   :  { %v485_v23 = vadd.f32 %v675_v17, %v402_v22 }
 0x146   :  { %501 = vst [vmem:[#allocation8 + $0x40] sm:$0xff] %v485_v23 }
 0x147   :  { %v387_v24 = vpop.f32.mrf.mxu1 }
 0x148   :  { %v479_v25 = vadd.f32 %v675_v17, %v387_v24 }
 0x14a   :  { %495 = vst [vmem:[#allocation8 + $0x10] sm:$0xff] %v479_v25 }
 0x14b   :  { %v404_v26 = vpop.f32.mrf.mxu3 }
 0x14c   :  { %v486_v27 = vadd.f32 %v675_v17, %v404_v26 }
 0x14e   :  { %502 = vst [vmem:[#allocation8 + $0x48] sm:$0xff] %v486_v27 }
 0x14f   :  { %v389_v28 = vpop.f32.mrf.mxu1 }
 0x150   :  { %v480_v29 = vadd.f32 %v675_v17, %v389_v28 }
 0x152   :  { %496 = vst [vmem:[#allocation8 + $0x18] sm:$0xff] %v480_v29 }
 0x153   :  { %v407_v30 = vpop.f32.mrf.mxu3 }
 0x154   :  { %v487_v31 = vadd.f32 %v675_v17, %v407_v30 }
 0x156   :  { %503 = vst [vmem:[#allocation8 + $0x50] sm:$0xff] %v487_v31 }
 0x157   :  { %v392_v32 = vpop.f32.mrf.mxu1 }
 0x158   :  { %v481_v33 = vadd.f32 %v675_v17, %v392_v32 }
 0x15a   :  { %497 = vst [vmem:[#allocation8 + $0x20] sm:$0xff] %v481_v33 }
 0x15b   :  { %v409_v34 = vpop.f32.mrf.mxu3 }
 0x15c   :  { %v488_v35 = vadd.f32 %v675_v17, %v409_v34 }
 0x15e   :  { %504 = vst [vmem:[#allocation8 + $0x58] sm:$0xff] %v488_v35 }
 0x15f   :  { %v394_v36 = vpop.f32.mrf.mxu1 }
 0x160   :  { %v482_v37 = vadd.f32 %v675_v17, %v394_v36 }
 0x162   :  { %498 = vst [vmem:[#allocation8 + $0x28] sm:$0xff] %v482_v37 }
 0x163   :  { %v412_v38 = vpop.f32.mrf.mxu3 }
 0x164   :  { %v489_v39 = vadd.f32 %v675_v17, %v412_v38 }
 0x166   :  { %505 = vst [vmem:[#allocation8 + $0x60] sm:$0xff] %v489_v39 }
 0x167   :  { %v397_v40 = vpop.f32.mrf.mxu1 }
 0x168   :  { %v483_v41 = vadd.f32 %v675_v17, %v397_v40 }
 0x16a   :  { %499 = vst [vmem:[#allocation8 + $0x30] sm:$0xff] %v483_v41 }
 0x16b   :  { %v414_v42 = vpop.f32.mrf.mxu3 }
 0x16c   :  { %v490_v43 = vadd.f32 %v675_v17, %v414_v42 }
 0x16e   :  { %506 = vst [vmem:[#allocation8 + $0x68] sm:$0xff] %v490_v43 }
 0x16f   :  { %v399_v44 = vpop.f32.mrf.mxu1 }
 0x170   :  { %v484_v45 = vadd.f32 %v675_v17, %v399_v44 }
 0x172   :  { %500 = vst [vmem:[#allocation8 + $0x38] sm:$0xff] %v484_v45 }
 0x173   :  { %v417_v46 = vpop.f32.mrf.mxu3 }
 0x174   :  { %v491_v47 = vadd.f32 %v675_v17, %v417_v46 }
 0x176   :  { %507 = vst [vmem:[#allocation8 + $0x70] sm:$0xff] %v491_v47 }
 0x17b   :  { %v419_v48 = vpop.f32.mrf.mxu3 }
 0x17c   :  { %v492_v49 = vadd.f32 %v675_v17, %v419_v48 }
 0x17e   :  { %508 = vst [vmem:[#allocation8 + $0x78] sm:$0xff] %v492_v49 }
 0x17f   :  { %521 = dma.vmem_to_hbm [thread:$0]  %s514_s10, 2048, %s516_s13, [#allocation4], %s784_s14, %s784_s14, %s785_s15  }
 0x180   :  { %776 = dma.done.wait [#allocation4], 2048  }
 0x181   :  { %777 = vsyncadd [#allocation4], 4294965248 }
 0x182   :  { %526 = vsyncpa [#allocation3], 1 }
 0x183   :  { %527 = vsyncpa [#allocation6], 1 }
 0x184   :  { %528 = vsyncpa [#allocation4], 1 }

</bundles_post_ra>
